<compile_context>
chip_gen: v7x
topology: tpu7x:2x2x1
jax: 0.10.0
libtpu: 0.0.40
codegen_flags: <defaults>
</compile_context>

<pallas_src>
import jax
import jax.numpy as jnp
from jax.experimental import pallas as pl
from jax.experimental.pallas import tpu as pltpu

EPS = 1e-5


def _round_up(v, m):
    return (v + m - 1) // m * m


def _pad2(a, rows, cols):
    pr, pc = rows - a.shape[0], cols - a.shape[1]
    if pr or pc:
        a = jnp.pad(a, ((0, pr), (0, pc)))
    return a


# --------------------------------------------------------------------------- #
# Kernel
# --------------------------------------------------------------------------- #
def _make_kernel(n_real: int, n_pad: int, tk: int, has_ds: bool):
    """Fused ResBlock kernel. Grid axis = hidden/out channel tiles of width tk."""
    inv_n = 1.0 / float(n_real)

    def _bn(h, gamma, beta):
        # Training-mode BN, single pass: biased variance via E[h^2] - mu^2.
        # Padded batch rows of h are exactly zero (x is zero-padded), so summing
        # over all rows and dividing by the REAL batch size is exact.
        s = jnp.sum(h, axis=0, keepdims=True)
        ss = jnp.sum(h * h, axis=0, keepdims=True)
        mu = s * inv_n
        var = jnp.maximum(ss * inv_n - mu * mu, 0.0)
        return (h - mu) * jax.lax.rsqrt(var + EPS) * gamma + beta

    def _mask_rows(acc):
        # Zero padded batch rows ONCE (epilogue only) so they do not pollute BN2.
        if n_pad > n_real:
            row = jax.lax.broadcasted_iota(jnp.int32, acc.shape, 0)
            acc = jnp.where(row < n_real, acc, 0.0)
        return acc

    if has_ds:

        def kernel(x_ref, w1_ref, g1_ref, be1_ref, w2_ref, g2_ref, be2_ref,
                   wd_ref, gd_ref, bed_ref, o_ref, ds_ref):
            k = pl.program_id(0)

            @pl.when(k == 0)
            def _():
                o_ref[...] = jnp.zeros_like(o_ref)

            x_bf = x_ref[...]                          # resident bf16 (N_p, Cin_p)

            # ---- layer 1 on this hidden tile: x @ W1[:, tile]  (bf16 MXU, f32 acc)
            h1 = jnp.dot(x_bf, w1_ref[...], preferred_element_type=jnp.float32)
            a1 = jnp.maximum(_bn(h1, g1_ref[...], be1_ref[...]), 0.0)

            # ---- layer 2 partial contraction accumulates into the resident output
            o_ref[...] += jnp.dot(a1.astype(jnp.bfloat16), w2_ref[...],
                                  preferred_element_type=jnp.float32)

            # ---- downsample branch for THIS output-column tile (streamed Wd)
            hd = jnp.dot(x_bf, wd_ref[...], preferred_element_type=jnp.float32)
            col = pl.multiple_of(k * tk, tk)
            ds_ref[:, pl.ds(col, tk)] = _bn(hd, gd_ref[...], bed_ref[...])

            # ---- final step: BN2, residual add, ReLU, lane-dense store
            @pl.when(k == pl.num_programs(0) - 1)
            def _():
                acc = _mask_rows(o_ref[...])
                out = _bn(acc, g2_ref[...], be2_ref[...]) + ds_ref[...]
                o_ref[...] = jnp.maximum(out, 0.0).astype(o_ref.dtype)

        return kernel

    def kernel(x_ref, xf_ref, w1_ref, g1_ref, be1_ref, w2_ref, g2_ref, be2_ref,
               o_ref):
        k = pl.program_id(0)

        @pl.when(k == 0)
        def _():
            o_ref[...] = jnp.zeros_like(o_ref)

        x_bf = x_ref[...]
        h1 = jnp.dot(x_bf, w1_ref[...], preferred_element_type=jnp.float32)
        a1 = jnp.maximum(_bn(h1, g1_ref[...], be1_ref[...]), 0.0)
        o_ref[...] += jnp.dot(a1.astype(jnp.bfloat16), w2_ref[...],
                              preferred_element_type=jnp.float32)

        @pl.when(k == pl.num_programs(0) - 1)
        def _():
            acc = _mask_rows(o_ref[...])
            out = _bn(acc, g2_ref[...], be2_ref[...]) + xf_ref[...]  # exact f32 skip
            o_ref[...] = jnp.maximum(out, 0.0).astype(o_ref.dtype)

    return kernel


# --------------------------------------------------------------------------- #
# VMEM budgeting / tile selection
# --------------------------------------------------------------------------- #
def _vmem_estimate(n_p, cin_p, ch_p, tk, has_ds):
    """Conservative VMEM estimate (assumes default double-buffering everywhere)."""
    bf, f32 = 2, 4
    est = 2 * n_p * cin_p * bf            # x (bf16, constant index)
    est += 2 * n_p * ch_p * f32           # resident output / accumulator block
    est += 2 * cin_p * tk * bf            # W1 column tile
    est += 2 * tk * ch_p * bf             # W2 row tile
    est += 2 * 2 * tk * f32               # gamma1 / beta1 tiles
    est += 2 * 2 * ch_p * f32             # gamma2 / beta2 (resident)
    if has_ds:
        est += 2 * cin_p * tk * bf        # Wd column tile (streamed)
        est += 2 * 2 * tk * f32           # gamma_d / beta_d tiles
        est += n_p * ch_p * f32           # downsample scratch slab (single buffer)
    else:
        est += 2 * n_p * ch_p * f32       # exact f32 x for the identity skip
    return est


def _pick_tile(n_p, cin_p, ch_p, has_ds, budget, max_tile=None):
    cands = [t for t in range(128, ch_p + 1, 128) if ch_p % t == 0]
    if max_tile is not None:
        capped = [t for t in cands if t <= max_tile]
        cands = capped if capped else [cands[0]]
    for t in sorted(cands, reverse=True):        # largest tile that fits the budget
        if _vmem_estimate(n_p, cin_p, ch_p, t, has_ds) <= budget:
            return t
    return min(cands)


# --------------------------------------------------------------------------- #
# Wrapper
# --------------------------------------------------------------------------- #
def resblock_forward(x, params, *, vmem_budget_bytes=24 << 20, max_hidden_tile=None):
    """x: (N, C_in) float32. params: see init_params. Returns (N, C_out) float32."""
    n, c_in = x.shape
    c_out = params["w1"].shape[1]
    has_ds = "wd" in params
    assert has_ds or c_in == c_out, "identity skip requires C_in == C_out"

    f32, bf16 = jnp.float32, jnp.bfloat16

    n_p = _round_up(n, 8)
    cin_p = _round_up(c_in, 128)
    ch_p = _round_up(c_out, 128)          # hidden == out channels, padded

    tk = _pick_tile(n_p, cin_p, ch_p, has_ds, vmem_budget_bytes, max_hidden_tile)
    n_k = ch_p // tk

    # Pad to lane/sublane-aligned shapes.  Linear biases are intentionally NOT
    # passed (training-mode BN cancels them exactly).
    x_f32 = _pad2(x.astype(f32), n_p, cin_p)
    x_bf = x_f32.astype(bf16)             # MXU operand, shipped as bf16
    w1 = _pad2(params["w1"], cin_p, ch_p).astype(bf16)
    g1 = _pad2(params["g1"], 1, ch_p).astype(f32)
    be1 = _pad2(params["be1"], 1, ch_p).astype(f32)
    w2 = _pad2(params["w2"], ch_p, ch_p).astype(bf16)
    g2 = _pad2(params["g2"], 1, ch_p).astype(f32)
    be2 = _pad2(params["be2"], 1, ch_p).astype(f32)

    if has_ds:
        wd = _pad2(params["wd"], cin_p, ch_p).astype(bf16)
        gd = _pad2(params["gd"], 1, ch_p).astype(f32)
        bed = _pad2(params["bed"], 1, ch_p).astype(f32)
        args = [x_bf, w1, g1, be1, w2, g2, be2, wd, gd, bed]
        in_specs = [
            pl.BlockSpec((n_p, cin_p), lambda k: (0, 0)),   # x bf16: VMEM-resident
            pl.BlockSpec((cin_p, tk), lambda k: (0, k)),    # W1 column tile (pipelined)
            pl.BlockSpec((1, tk), lambda k: (0, k)),        # gamma1 tile
            pl.BlockSpec((1, tk), lambda k: (0, k)),        # beta1 tile
            pl.BlockSpec((tk, ch_p), lambda k: (k, 0)),     # W2 row tile (pipelined)
            pl.BlockSpec((1, ch_p), lambda k: (0, 0)),      # gamma2: resident
            pl.BlockSpec((1, ch_p), lambda k: (0, 0)),      # beta2: resident
            pl.BlockSpec((cin_p, tk), lambda k: (0, k)),    # Wd column tile (streamed)
            pl.BlockSpec((1, tk), lambda k: (0, k)),        # gamma_d tile
            pl.BlockSpec((1, tk), lambda k: (0, k)),        # beta_d tile
        ]
        scratch = [pltpu.VMEM((n_p, ch_p), f32)]            # BN'd downsample slab
    else:
        args = [x_bf, x_f32, w1, g1, be1, w2, g2, be2]
        in_specs = [
            pl.BlockSpec((n_p, cin_p), lambda k: (0, 0)),   # x bf16 (MXU operand)
            pl.BlockSpec((n_p, cin_p), lambda k: (0, 0)),   # x f32 (exact identity skip)
            pl.BlockSpec((cin_p, tk), lambda k: (0, k)),
            pl.BlockSpec((1, tk), lambda k: (0, k)),
            pl.BlockSpec((1, tk), lambda k: (0, k)),
            pl.BlockSpec((tk, ch_p), lambda k: (k, 0)),
            pl.BlockSpec((1, ch_p), lambda k: (0, 0)),
            pl.BlockSpec((1, ch_p), lambda k: (0, 0)),
        ]
        scratch = []

    est = _vmem_estimate(n_p, cin_p, ch_p, tk, has_ds)
    vmem_limit = int(min(max(est + (8 << 20), 24 << 20), 48 << 20))  # v7x-safe cap

    kernel = _make_kernel(n, n_p, tk, has_ds)

    out_p = pl.pallas_call(
        kernel,
        out_shape=jax.ShapeDtypeStruct((n_p, ch_p), f32),
        grid_spec=pltpu.PrefetchScalarGridSpec(
            num_scalar_prefetch=0,
            grid=(n_k,),
            in_specs=in_specs,
            out_specs=pl.BlockSpec((n_p, ch_p), lambda k: (0, 0)),  # resident accumulator
            scratch_shapes=scratch,
        ),
        compiler_params=pltpu.CompilerParams(
            dimension_semantics=("arbitrary",),   # reduction over hidden tiles
            vmem_limit_bytes=vmem_limit,
        ),
    )(*args)

    return out_p[:n, :c_out]


# --------------------------------------------------------------------------- #
# Params / references / checks
# --------------------------------------------------------------------------- #
def init_params(key, in_channels, out_channels):
    """Deterministic synthetic parameter init (PyTorch-like scales).
    Biases are kept only for the full-precision semantic reference; the kernel
    drops them because training-mode BN cancels them exactly."""
    ks = jax.random.split(key, 12)
    s1 = 1.0 / jnp.sqrt(in_channels)
    s2 = 1.0 / jnp.sqrt(out_channels)
    params = {
        # Linear weights stored transposed: (Cin, Cout) so kernel does x @ W.
        "w1": jax.random.uniform(ks[0], (in_channels, out_channels), jnp.float32, -s1, s1),
        "b1": jax.random.uniform(ks[1], (1, out_channels), jnp.float32, -s1, s1),
        "g1": jax.random.uniform(ks[2], (1, out_channels), jnp.float32, 0.7, 1.3),
        "be1": jax.random.uniform(ks[3], (1, out_channels), jnp.float32, -0.2, 0.2),
        "w2": jax.random.uniform(ks[4], (out_channels, out_channels), jnp.float32, -s2, s2),
        "b2": jax.random.uniform(ks[5], (1, out_channels), jnp.float32, -s2, s2),
        "g2": jax.random.uniform(ks[6], (1, out_channels), jnp.float32, 0.7, 1.3),
        "be2": jax.random.uniform(ks[7], (1, out_channels), jnp.float32, -0.2, 0.2),
    }
    if in_channels != out_channels:
        params.update({
            "wd": jax.random.uniform(ks[8], (in_channels, out_channels), jnp.float32, -s1, s1),
            "bd": jax.random.uniform(ks[9], (1, out_channels), jnp.float32, -s1, s1),
            "gd": jax.random.uniform(ks[10], (1, out_channels), jnp.float32, 0.7, 1.3),
            "bed": jax.random.uniform(ks[11], (1, out_channels), jnp.float32, -0.2, 0.2),
        })
    return params


def _bn_ref(h, g, b):
    mu = h.mean(axis=0, keepdims=True)
    var = ((h - mu) ** 2).mean(axis=0, keepdims=True)
    return (h - mu) / jnp.sqrt(var + EPS) * g + b


def resblock_ref_f32(x, params):
    """Full-precision reference with the exact PyTorch-module math (incl. biases)."""
    h = x @ params["w1"] + params["b1"]
    h = jnp.maximum(_bn_ref(h, params["g1"], params["be1"]), 0.0)
    h = h @ params["w2"] + params["b2"]
    h = _bn_ref(h, params["g2"], params["be2"])
    if "wd" in params:
        idn = _bn_ref(x @ params["wd"] + params["bd"], params["gd"], params["bed"])
    else:
        idn = x
    return jnp.maximum(h + idn, 0.0)


def resblock_ref_matched(x, params):
    """Reference with the same bf16-operand / f32-accumulate, bias-free math as
    the kernel (bias is exactly cancelled by training-mode BN)."""
    bf = jnp.bfloat16

    def mm(a, w):
        return jnp.dot(a.astype(bf), w.astype(bf), preferred_element_type=jnp.float32)

    def bn(h, g, b):
        mu = h.mean(axis=0, keepdims=True)
        var = jnp.maximum((h * h).mean(axis=0, keepdims=True) - mu * mu, 0.0)
        return (h - mu) * jax.lax.rsqrt(var + EPS) * g + b

    h = jnp.maximum(bn(mm(x, params["w1"]), params["g1"], params["be1"]), 0.0)
    h = bn(mm(h, params["w2"]), params["g2"], params["be2"])
    if "wd" in params:
        idn = bn(mm(x, params["wd"]), params["gd"], params["bed"])
    else:
        idn = x
    return jnp.maximum(h + idn, 0.0)


def _check(out, x, params, name):
    ref_m = resblock_ref_matched(x, params)
    ref_f = resblock_ref_f32(x, params)
    d_m = float(jnp.max(jnp.abs(out - ref_m)))
    d_f = float(jnp.max(jnp.abs(out - ref_f)))
    assert d_m < 5e-3, f"{name}: matched-precision mismatch {d_m}"
    # Loose check vs exact PyTorch-semantics f32 reference: gap is solely due to
    # bf16 MXU operands (accumulation is f32).
    assert d_f < 2e-1, f"{name}: semantic mismatch {d_f}"


if __name__ == "__main__":
    key = jax.random.PRNGKey(0)
    kx1, kx2, kx3, kx4, kp1, kp2, kp3, kp4 = jax.random.split(key, 8)

    # Case 1: downsample branch, non-aligned N / C_in / C_out (padding + row mask).
    n1, ci1, co1 = 12, 40, 96
    x1 = jax.random.normal(kx1, (n1, ci1), jnp.float32)
    p1 = init_params(kp1, ci1, co1)
    out1 = jax.block_until_ready(resblock_forward(x1, p1))
    assert out1.shape == (n1, co1)
    _check(out1, x1, p1, "case1")

    # Case 2: identity skip (C_in == C_out), already lane/sublane aligned.
    n2, c2 = 16, 128
    x2 = jax.random.normal(kx2, (n2, c2), jnp.float32)
    p2 = init_params(kp2, c2, c2)
    out2 = jax.block_until_ready(resblock_forward(x2, p2))
    assert out2.shape == (n2, c2)
    _check(out2, x2, p2, "case2")

    # Case 3: downsample with a forced multi-step hidden-channel reduction grid
    # (tk capped at 128 -> grid=(3,)), exercising streamed Wd tiles and the
    # per-step downsample scratch writes.
    n3, ci3, co3 = 8, 64, 384
    x3 = jax.random.normal(kx3, (n3, ci3), jnp.float32)
    p3 = init_params(kp3, ci3, co3)
    out3 = jax.block_until_ready(resblock_forward(x3, p3, max_hidden_tile=128))
    assert out3.shape == (n3, co3)
    _check(out3, x3, p3, "case3")

    # Case 4: identity skip with a multi-step reduction grid (grid=(2,)).
    n4, c4 = 16, 256
    x4 = jax.random.normal(kx4, (n4, c4), jnp.float32)
    p4 = init_params(kp4, c4, c4)
    out4 = jax.block_until_ready(resblock_forward(x4, p4, max_hidden_tile=128))
    assert out4.shape == (n4, c4)
    _check(out4, x4, p4, "case4")

    print("KERNEL_OK")
</pallas_src>

<mosaic_0001>
module attributes {stable_mosaic.version = 11 : i64} {
  func.func @kernel(%arg0: i32, %arg1: memref<16x128xbf16, #tpu.memory_space<vmem>>, %arg2: memref<128x128xbf16, #tpu.memory_space<vmem>>, %arg3: memref<1x128xf32, #tpu.memory_space<vmem>>, %arg4: memref<1x128xf32, #tpu.memory_space<vmem>>, %arg5: memref<128x128xbf16, #tpu.memory_space<vmem>>, %arg6: memref<1x128xf32, #tpu.memory_space<vmem>>, %arg7: memref<1x128xf32, #tpu.memory_space<vmem>>, %arg8: memref<128x128xbf16, #tpu.memory_space<vmem>>, %arg9: memref<1x128xf32, #tpu.memory_space<vmem>>, %arg10: memref<1x128xf32, #tpu.memory_space<vmem>>, %arg11: memref<16x128xf32, #tpu.memory_space<vmem>>, %arg12: memref<16x128xf32, #tpu.memory_space<vmem>>) attributes {dimension_semantics = [#tpu.dimension_semantics<arbitrary>], iteration_bounds = array<i64: 1>, scalar_prefetch = 0 : i64, scratch_operands = 1 : i64, tpu.core_type = #tpu.core_type<tc>, window_params = [{pipeline_mode = #tpu.pipeline_mode<synchronous>, transform_indices = @transform_0, window_bounds = array<i64: 16, 128>}, {transform_indices = @transform_1, window_bounds = array<i64: 128, 128>}, {transform_indices = @transform_2, window_bounds = array<i64: 1, 128>}, {transform_indices = @transform_3, window_bounds = array<i64: 1, 128>}, {transform_indices = @transform_4, window_bounds = array<i64: 128, 128>}, {pipeline_mode = #tpu.pipeline_mode<synchronous>, transform_indices = @transform_5, window_bounds = array<i64: 1, 128>}, {pipeline_mode = #tpu.pipeline_mode<synchronous>, transform_indices = @transform_6, window_bounds = array<i64: 1, 128>}, {transform_indices = @transform_7, window_bounds = array<i64: 128, 128>}, {transform_indices = @transform_8, window_bounds = array<i64: 1, 128>}, {transform_indices = @transform_9, window_bounds = array<i64: 1, 128>}, {pipeline_mode = #tpu.pipeline_mode<synchronous>, transform_indices = @transform_10, window_bounds = array<i64: 16, 128>}]} {
    %c0_i32 = arith.constant 0 : i32
    %0 = arith.cmpi eq, %arg0, %c0_i32 : i32
    %1 = arith.extui %0 : i1 to i32
    %c0_i32_0 = arith.constant 0 : i32
    %2 = arith.cmpi ne, %1, %c0_i32_0 : i32
    scf.if %2 {
      %cst_38 = arith.constant 0.000000e+00 : f32
      %75 = vector.broadcast %cst_38 : f32 to vector<16x128xf32>
      %c0_39 = arith.constant 0 : index
      %c0_40 = arith.constant 0 : index
      %76 = vector.load %arg11[%c0_39, %c0_40] : memref<16x128xf32, #tpu.memory_space<vmem>>, vector<16x128xf32>
      tpu.vector_store %arg11[%c0_39, %c0_40], %75 {strides = array<i32>} : memref<16x128xf32, #tpu.memory_space<vmem>>, vector<16x128xf32>,
    } else {
    }
    %c0 = arith.constant 0 : index
    %c0_1 = arith.constant 0 : index
    %3 = vector.load %arg1[%c0, %c0_1] : memref<16x128xbf16, #tpu.memory_space<vmem>>, vector<16x128xbf16>
    %c0_2 = arith.constant 0 : index
    %c0_3 = arith.constant 0 : index
    %4 = vector.load %arg2[%c0_2, %c0_3] : memref<128x128xbf16, #tpu.memory_space<vmem>>, vector<128x128xbf16>
    %cst = arith.constant dense<0.000000e+00> : vector<16x128xf32>
    %5 = tpu.matmul %3, %4, %cst {dimension_numbers = #tpu.dot_dimension_numbers<[1], [0], [0], [1], [0, 0, 1, 1], [], []>} : vector<16x128xbf16>, vector<128x128xbf16>, vector<16x128xf32> -> vector<16x128xf32>
    %c0_4 = arith.constant 0 : index
    %c0_5 = arith.constant 0 : index
    %6 = vector.load %arg3[%c0_4, %c0_5] : memref<1x128xf32, #tpu.memory_space<vmem>>, vector<1x128xf32>
    %c0_6 = arith.constant 0 : index
    %c0_7 = arith.constant 0 : index
    %7 = vector.load %arg4[%c0_6, %c0_7] : memref<1x128xf32, #tpu.memory_space<vmem>>, vector<1x128xf32>
    %cst_8 = arith.constant dense<0.000000e+00> : vector<128xf32>
    %8 = vector.multi_reduction <add>, %5, %cst_8 [0] : vector<16x128xf32> to vector<128xf32>
    %9 = vector.shape_cast %8 : vector<128xf32> to vector<1x128xf32>
    %10 = arith.mulf %5, %5 : vector<16x128xf32>
    %cst_9 = arith.constant dense<0.000000e+00> : vector<128xf32>
    %11 = vector.multi_reduction <add>, %10, %cst_9 [0] : vector<16x128xf32> to vector<128xf32>
    %12 = vector.shape_cast %11 : vector<128xf32> to vector<1x128xf32>
    %cst_10 = arith.constant 0.0833333358 : f32
    %13 = vector.broadcast %cst_10 : f32 to vector<1x128xf32>
    %14 = arith.mulf %9, %13 : vector<1x128xf32>
    %cst_11 = arith.constant 0.0833333358 : f32
    %15 = vector.broadcast %cst_11 : f32 to vector<1x128xf32>
    %16 = arith.mulf %12, %15 : vector<1x128xf32>
    %17 = arith.mulf %14, %14 : vector<1x128xf32>
    %18 = arith.subf %16, %17 : vector<1x128xf32>
    %cst_12 = arith.constant 0.000000e+00 : f32
    %19 = vector.broadcast %cst_12 : f32 to vector<1x128xf32>
    %20 = arith.maximumf %18, %19 : vector<1x128xf32>
    %21 = vector.broadcast %14 : vector<1x128xf32> to vector<16x128xf32>
    %22 = arith.subf %5, %21 : vector<16x128xf32>
    %cst_13 = arith.constant 9.99999974E-6 : f32
    %23 = vector.broadcast %cst_13 : f32 to vector<1x128xf32>
    %24 = arith.addf %20, %23 : vector<1x128xf32>
    %25 = math.rsqrt %24 : vector<1x128xf32>
    %26 = vector.broadcast %25 : vector<1x128xf32> to vector<16x128xf32>
    %27 = arith.mulf %22, %26 : vector<16x128xf32>
    %28 = vector.broadcast %6 : vector<1x128xf32> to vector<16x128xf32>
    %29 = arith.mulf %27, %28 : vector<16x128xf32>
    %30 = vector.broadcast %7 : vector<1x128xf32> to vector<16x128xf32>
    %31 = arith.addf %29, %30 : vector<16x128xf32>
    %cst_14 = arith.constant 0.000000e+00 : f32
    %32 = vector.broadcast %cst_14 : f32 to vector<16x128xf32>
    %33 = arith.maximumf %31, %32 : vector<16x128xf32>
    %c0_15 = arith.constant 0 : index
    %c0_16 = arith.constant 0 : index
    %34 = vector.load %arg11[%c0_15, %c0_16] : memref<16x128xf32, #tpu.memory_space<vmem>>, vector<16x128xf32>
    %35 = arith.truncf %33 : vector<16x128xf32> to vector<16x128xbf16>
    %c0_17 = arith.constant 0 : index
    %c0_18 = arith.constant 0 : index
    %36 = vector.load %arg5[%c0_17, %c0_18] : memref<128x128xbf16, #tpu.memory_space<vmem>>, vector<128x128xbf16>
    %cst_19 = arith.constant dense<0.000000e+00> : vector<16x128xf32>
    %37 = tpu.matmul %35, %36, %cst_19 {dimension_numbers = #tpu.dot_dimension_numbers<[1], [0], [0], [1], [0, 0, 1, 1], [], []>} : vector<16x128xbf16>, vector<128x128xbf16>, vector<16x128xf32> -> vector<16x128xf32>
    %38 = arith.addf %34, %37 : vector<16x128xf32>
    %c0_20 = arith.constant 0 : index
    %c0_21 = arith.constant 0 : index
    %39 = vector.load %arg11[%c0_20, %c0_21] : memref<16x128xf32, #tpu.memory_space<vmem>>, vector<16x128xf32>
    tpu.vector_store %arg11[%c0_20, %c0_21], %38 {strides = array<i32>} : memref<16x128xf32, #tpu.memory_space<vmem>>, vector<16x128xf32>,
    %c0_22 = arith.constant 0 : index
    %c0_23 = arith.constant 0 : index
    %40 = vector.load %arg8[%c0_22, %c0_23] : memref<128x128xbf16, #tpu.memory_space<vmem>>, vector<128x128xbf16>
    %cst_24 = arith.constant dense<0.000000e+00> : vector<16x128xf32>
    %41 = tpu.matmul %3, %40, %cst_24 {dimension_numbers = #tpu.dot_dimension_numbers<[1], [0], [0], [1], [0, 0, 1, 1], [], []>} : vector<16x128xbf16>, vector<128x128xbf16>, vector<16x128xf32> -> vector<16x128xf32>
    %c128_i32 = arith.constant 128 : i32
    %42 = arith.muli %arg0, %c128_i32 : i32
    %43 = tpu.assume_multiple %42, 128 : i32
    %c0_25 = arith.constant 0 : index
    %c0_26 = arith.constant 0 : index
    %44 = vector.load %arg9[%c0_25, %c0_26] : memref<1x128xf32, #tpu.memory_space<vmem>>, vector<1x128xf32>
    %c0_27 = arith.constant 0 : index
    %c0_28 = arith.constant 0 : index
    %45 = vector.load %arg10[%c0_27, %c0_28] : memref<1x128xf32, #tpu.memory_space<vmem>>, vector<1x128xf32>
    %cst_29 = arith.constant dense<0.000000e+00> : vector<128xf32>
    %46 = vector.multi_reduction <add>, %41, %cst_29 [0] : vector<16x128xf32> to vector<128xf32>
    %47 = vector.shape_cast %46 : vector<128xf32> to vector<1x128xf32>
    %48 = arith.mulf %41, %41 : vector<16x128xf32>
    %cst_30 = arith.constant dense<0.000000e+00> : vector<128xf32>
    %49 = vector.multi_reduction <add>, %48, %cst_30 [0] : vector<16x128xf32> to vector<128xf32>
    %50 = vector.shape_cast %49 : vector<128xf32> to vector<1x128xf32>
    %cst_31 = arith.constant 0.0833333358 : f32
    %51 = vector.broadcast %cst_31 : f32 to vector<1x128xf32>
    %52 = arith.mulf %47, %51 : vector<1x128xf32>
    %cst_32 = arith.constant 0.0833333358 : f32
    %53 = vector.broadcast %cst_32 : f32 to vector<1x128xf32>
    %54 = arith.mulf %50, %53 : vector<1x128xf32>
    %55 = arith.mulf %52, %52 : vector<1x128xf32>
    %56 = arith.subf %54, %55 : vector<1x128xf32>
    %cst_33 = arith.constant 0.000000e+00 : f32
    %57 = vector.broadcast %cst_33 : f32 to vector<1x128xf32>
    %58 = arith.maximumf %56, %57 : vector<1x128xf32>
    %59 = vector.broadcast %52 : vector<1x128xf32> to vector<16x128xf32>
    %60 = arith.subf %41, %59 : vector<16x128xf32>
    %cst_34 = arith.constant 9.99999974E-6 : f32
    %61 = vector.broadcast %cst_34 : f32 to vector<1x128xf32>
    %62 = arith.addf %58, %61 : vector<1x128xf32>
    %63 = math.rsqrt %62 : vector<1x128xf32>
    %64 = vector.broadcast %63 : vector<1x128xf32> to vector<16x128xf32>
    %65 = arith.mulf %60, %64 : vector<16x128xf32>
    %66 = vector.broadcast %44 : vector<1x128xf32> to vector<16x128xf32>
    %67 = arith.mulf %65, %66 : vector<16x128xf32>
    %68 = vector.broadcast %45 : vector<1x128xf32> to vector<16x128xf32>
    %69 = arith.addf %67, %68 : vector<16x128xf32>
    %c0_35 = arith.constant 0 : index
    %70 = arith.index_cast %43 : i32 to index
    %71 = vector.load %arg12[%c0_35, %70] : memref<16x128xf32, #tpu.memory_space<vmem>>, vector<16x128xf32>
    tpu.vector_store %arg12[%c0_35, %70], %69 {strides = array<i32>} : memref<16x128xf32, #tpu.memory_space<vmem>>, vector<16x128xf32>,
    %c0_i32_36 = arith.constant 0 : i32
    %72 = arith.cmpi eq, %arg0, %c0_i32_36 : i32
    %73 = arith.extui %72 : i1 to i32
    %c0_i32_37 = arith.constant 0 : i32
    %74 = arith.cmpi ne, %73, %c0_i32_37 : i32
    scf.if %74 {
      %c0_38 = arith.constant 0 : index
      %c0_39 = arith.constant 0 : index
      %75 = vector.load %arg11[%c0_38, %c0_39] : memref<16x128xf32, #tpu.memory_space<vmem>>, vector<16x128xf32>
      %76 = tpu.iota {dimensions = array<i32: 0>} : vector<16x128xi32>
      %c12_i32 = arith.constant 12 : i32
      %77 = vector.broadcast %c12_i32 : i32 to vector<16x128xi32>
      %78 = arith.cmpi slt, %76, %77 : vector<16x128xi32>
      %cst_40 = arith.constant 0.000000e+00 : f32
      %79 = vector.broadcast %cst_40 : f32 to vector<16x128xf32>
      %80 = arith.select %78, %75, %79 : vector<16x128xi1>, vector<16x128xf32>
      %c0_41 = arith.constant 0 : index
      %c0_42 = arith.constant 0 : index
      %81 = vector.load %arg6[%c0_41, %c0_42] : memref<1x128xf32, #tpu.memory_space<vmem>>, vector<1x128xf32>
      %c0_43 = arith.constant 0 : index
      %c0_44 = arith.constant 0 : index
      %82 = vector.load %arg7[%c0_43, %c0_44] : memref<1x128xf32, #tpu.memory_space<vmem>>, vector<1x128xf32>
      %cst_45 = arith.constant dense<0.000000e+00> : vector<128xf32>
      %83 = vector.multi_reduction <add>, %80, %cst_45 [0] : vector<16x128xf32> to vector<128xf32>
      %84 = vector.shape_cast %83 : vector<128xf32> to vector<1x128xf32>
      %85 = arith.mulf %80, %80 : vector<16x128xf32>
      %cst_46 = arith.constant dense<0.000000e+00> : vector<128xf32>
      %86 = vector.multi_reduction <add>, %85, %cst_46 [0] : vector<16x128xf32> to vector<128xf32>
      %87 = vector.shape_cast %86 : vector<128xf32> to vector<1x128xf32>
      %cst_47 = arith.constant 0.0833333358 : f32
      %88 = vector.broadcast %cst_47 : f32 to vector<1x128xf32>
      %89 = arith.mulf %84, %88 : vector<1x128xf32>
      %cst_48 = arith.constant 0.0833333358 : f32
      %90 = vector.broadcast %cst_48 : f32 to vector<1x128xf32>
      %91 = arith.mulf %87, %90 : vector<1x128xf32>
      %92 = arith.mulf %89, %89 : vector<1x128xf32>
      %93 = arith.subf %91, %92 : vector<1x128xf32>
      %cst_49 = arith.constant 0.000000e+00 : f32
      %94 = vector.broadcast %cst_49 : f32 to vector<1x128xf32>
      %95 = arith.maximumf %93, %94 : vector<1x128xf32>
      %96 = vector.broadcast %89 : vector<1x128xf32> to vector<16x128xf32>
      %97 = arith.subf %80, %96 : vector<16x128xf32>
      %cst_50 = arith.constant 9.99999974E-6 : f32
      %98 = vector.broadcast %cst_50 : f32 to vector<1x128xf32>
      %99 = arith.addf %95, %98 : vector<1x128xf32>
      %100 = math.rsqrt %99 : vector<1x128xf32>
      %101 = vector.broadcast %100 : vector<1x128xf32> to vector<16x128xf32>
      %102 = arith.mulf %97, %101 : vector<16x128xf32>
      %103 = vector.broadcast %81 : vector<1x128xf32> to vector<16x128xf32>
      %104 = arith.mulf %102, %103 : vector<16x128xf32>
      %105 = vector.broadcast %82 : vector<1x128xf32> to vector<16x128xf32>
      %106 = arith.addf %104, %105 : vector<16x128xf32>
      %c0_51 = arith.constant 0 : index
      %c0_52 = arith.constant 0 : index
      %107 = vector.load %arg12[%c0_51, %c0_52] : memref<16x128xf32, #tpu.memory_space<vmem>>, vector<16x128xf32>
      %108 = arith.addf %106, %107 : vector<16x128xf32>
      %cst_53 = arith.constant 0.000000e+00 : f32
      %109 = vector.broadcast %cst_53 : f32 to vector<16x128xf32>
      %110 = arith.maximumf %108, %109 : vector<16x128xf32>
      %c0_54 = arith.constant 0 : index
      %c0_55 = arith.constant 0 : index
      %111 = vector.load %arg11[%c0_54, %c0_55] : memref<16x128xf32, #tpu.memory_space<vmem>>, vector<16x128xf32>
      tpu.vector_store %arg11[%c0_54, %c0_55], %110 {strides = array<i32>} : memref<16x128xf32, #tpu.memory_space<vmem>>, vector<16x128xf32>,
    } else {
    }
    return
  }
  func.func @transform_0(%arg0: i32) -> (i32, i32) {
    %c0_i32 = arith.constant 0 : i32
    %c0_i32_0 = arith.constant 0 : i32
    %c0_i32_1 = arith.constant 0 : i32
    return %c0_i32, %c0_i32_0 : i32, i32
  }
  func.func @transform_1(%arg0: i32) -> (i32, i32) {
    %c0_i32 = arith.constant 0 : i32
    %c0_i32_0 = arith.constant 0 : i32
    return %c0_i32, %arg0 : i32, i32
  }
  func.func @transform_2(%arg0: i32) -> (i32, i32) {
    %c0_i32 = arith.constant 0 : i32
    %c0_i32_0 = arith.constant 0 : i32
    return %c0_i32, %arg0 : i32, i32
  }
  func.func @transform_3(%arg0: i32) -> (i32, i32) {
    %c0_i32 = arith.constant 0 : i32
    %c0_i32_0 = arith.constant 0 : i32
    return %c0_i32, %arg0 : i32, i32
  }
  func.func @transform_4(%arg0: i32) -> (i32, i32) {
    %c0_i32 = arith.constant 0 : i32
    %c0_i32_0 = arith.constant 0 : i32
    return %arg0, %c0_i32 : i32, i32
  }
  func.func @transform_5(%arg0: i32) -> (i32, i32) {
    %c0_i32 = arith.constant 0 : i32
    %c0_i32_0 = arith.constant 0 : i32
    %c0_i32_1 = arith.constant 0 : i32
    return %c0_i32, %c0_i32_0 : i32, i32
  }
  func.func @transform_6(%arg0: i32) -> (i32, i32) {
    %c0_i32 = arith.constant 0 : i32
    %c0_i32_0 = arith.constant 0 : i32
    %c0_i32_1 = arith.constant 0 : i32
    return %c0_i32, %c0_i32_0 : i32, i32
  }
  func.func @transform_7(%arg0: i32) -> (i32, i32) {
    %c0_i32 = arith.constant 0 : i32
    %c0_i32_0 = arith.constant 0 : i32
    return %c0_i32, %arg0 : i32, i32
  }
  func.func @transform_8(%arg0: i32) -> (i32, i32) {
    %c0_i32 = arith.constant 0 : i32
    %c0_i32_0 = arith.constant 0 : i32
    return %c0_i32, %arg0 : i32, i32
  }
  func.func @transform_9(%arg0: i32) -> (i32, i32) {
    %c0_i32 = arith.constant 0 : i32
    %c0_i32_0 = arith.constant 0 : i32
    return %c0_i32, %arg0 : i32, i32
  }
  func.func @transform_10(%arg0: i32) -> (i32, i32) {
    %c0_i32 = arith.constant 0 : i32
    %c0_i32_0 = arith.constant 0 : i32
    %c0_i32_1 = arith.constant 0 : i32
    return %c0_i32, %c0_i32_0 : i32, i32
  }
}

</mosaic_0001>

<bundles_post_ra>
// kernel: tpu_custom_call.1
= control target key start
LH: loop header
LB: loop body
LE: loop exit
PB: predicated region body
PF: predicated region fallthrough
CT: control target
= control target key end

     0   :  { %15 = vsyncpa [#allocation4], 0  ;;  %s1089_s0 = inlined_call_operand.hbm [shape: bf16[16,128], index: 0, kind: input, shape index: {}]   ;;  %s1090_s1 = inlined_call_operand.hbm [shape: bf16[128,128], index: 1, kind: input, shape index: {}]   ;;  %s1091_s2 = inlined_call_operand.vmem [shape: f32[1,128], index: 2, kind: input, shape index: {}]   ;;  %s1092_s3 = inlined_call_operand.vmem [shape: f32[1,128], index: 3, kind: input, shape index: {}]   ;;  %s1093_s4 = inlined_call_operand.hbm [shape: bf16[128,128], index: 4, kind: input, shape index: {}]   ;;  %s1094_s5 = inlined_call_operand.vmem [shape: f32[1,128], index: 5, kind: input, shape index: {}]   ;;  %s1095_s6 = inlined_call_operand.vmem [shape: f32[1,128], index: 6, kind: input, shape index: {}]   ;;  %s1096_s7 = inlined_call_operand.hbm [shape: bf16[128,128], index: 7, kind: input, shape index: {}]   ;;  %s1097_s8 = inlined_call_operand.vmem [shape: f32[1,128], index: 8, kind: input, shape index: {}]   ;;  %s1098_s9 = inlined_call_operand.vmem [shape: f32[1,128], index: 9, kind: input, shape index: {}]   ;;  %s1099_s10 = inlined_call_operand.hbm [shape: f32[16,128], index: 10, kind: output, shape index: {}]  }
   0x1   :  { %16 = vsyncpa [#allocation7], 0 }
   0x2   :  { %17 = vsyncpa [#allocation10], 0 }
   0x3   :  { %18 = vsyncpa [#allocation5], 0  ;;  %s889_s13 = smov [#allocation6]   ;;  %s890_s15 = smov [#allocation3]  }
   0x4   :  { %s36_s14 = sshll.u32 %s889_s13, 4  ;;  %s24_s16 = sshll.u32 %s890_s15, 4  ;;  %s37_s14 = int_to_ptr.vmem [resolvable:$true] %s36_s14  ;;  %s955_s16 = int_to_ptr.vmem [resolvable:$true] %s24_s16 }
   0x5   :  { %s771_s19 = scalar_lea.hbm %s1090_s1, 1024 }
   0x6   :  { %p772_p0 = scmp.ne.s32.totalorder %s1090_s1, %s771_s19  ;;  %p775_p1 = scmp.lt.u32.totalorder %s771_s19, %s1090_s1 }
   0x8   :  { %p777_p2 = pnand %p775_p1, %p772_p0 }
   0xa   :  { %780 = shalt.err (!%p777_p2)
}
   0xb   :  { %s781_s24 = scalar_lea.vmem %s37_s14, 1024  ;;  %p786_p4 = scmp.lt.s32.totalorder %s37_s14, %s37_s14 }
   0xc   :  { %p782_p3 = scmp.ne.s32.totalorder %s37_s14, %s781_s24  ;;  %p787_p5 = scmp.lt.s32.totalorder %s781_s24, %s781_s24 }
   0xe   :  { %p788_p6 = por %p787_p5, %p786_p4 }
  0x10   :  { %p789_p7 = pnand %p788_p6, %p782_p3 }
  0x12   :  { %792 = shalt.err (!%p789_p7)
}
  0x13   :  { %s891_s25 = smov 64   ;;  %s892_s26 = smov 4  }
  0x14   :  { %42 = dma.hbm_to_vmem [thread:$0]  %s1090_s1, 1024, %s37_s14, [#allocation7], %s891_s25, %s891_s25, %s892_s26  }
  0x15   :  { %s793_s11 = scalar_lea.hbm %s1089_s0, 128 }
  0x16   :  { %p794_p8 = scmp.ne.s32.totalorder %s1089_s0, %s793_s11  ;;  %p797_p9 = scmp.lt.u32.totalorder %s793_s11, %s1089_s0 }
  0x18   :  { %p799_p10 = pnand %p797_p9, %p794_p8 }
  0x1a   :  { %802 = shalt.err (!%p799_p10)
}
  0x1b   :  { %s803_s18 = scalar_lea.vmem %s955_s16, 128  ;;  %p808_p12 = scmp.lt.s32.totalorder %s955_s16, %s955_s16 }
  0x1c   :  { %p804_p11 = scmp.ne.s32.totalorder %s955_s16, %s803_s18  ;;  %p809_p13 = scmp.lt.s32.totalorder %s803_s18, %s803_s18 }
  0x1e   :  { %p810_p0 = por %p809_p13, %p808_p12 }
  0x20   :  { %p811_p1 = pnand %p810_p0, %p804_p11 }
  0x22   :  { %814 = shalt.err (!%p811_p1)
}
  0x23   :  { %30 = dma.hbm_to_vmem [thread:$0]  %s1089_s0, 128, %s955_s16, [#allocation4], %s891_s25, %s891_s25, %s892_s26  }
  0x24   :  { %s893_s19 = smov [#allocation8]   ;;  %s894_s21 = smov [#allocation9]  }
  0x25   :  { %s52_s20 = sshll.u32 %s893_s19, 4  ;;  %s68_s22 = sshll.u32 %s894_s21, 4  ;;  %s53_s20 = int_to_ptr.vmem [resolvable:$true] %s52_s20  ;;  %s992_s22 = int_to_ptr.vmem [resolvable:$true] %s68_s22 }
  0x26   :  { %s815_s27 = scalar_lea.hbm %s1093_s4, 1024 }
  0x27   :  { %p816_p2 = scmp.ne.s32.totalorder %s1093_s4, %s815_s27  ;;  %p819_p3 = scmp.lt.u32.totalorder %s815_s27, %s1093_s4 }
  0x29   :  { %p821_p4 = pnand %p819_p3, %p816_p2 }
  0x2b   :  { %824 = shalt.err (!%p821_p4)
}
  0x2c   :  { %s825_s0 = scalar_lea.vmem %s53_s20, 1024  ;;  %p830_p6 = scmp.lt.s32.totalorder %s53_s20, %s53_s20 }
  0x2d   :  { %p826_p5 = scmp.ne.s32.totalorder %s53_s20, %s825_s0  ;;  %p831_p7 = scmp.lt.s32.totalorder %s825_s0, %s825_s0 }
  0x2f   :  { %p832_p8 = por %p831_p7, %p830_p6 }
  0x31   :  { %p833_p9 = pnand %p832_p8, %p826_p5 }
  0x33   :  { %836 = shalt.err (!%p833_p9)
}
  0x34   :  { %58 = dma.hbm_to_vmem [thread:$0]  %s1093_s4, 1024, %s53_s20, [#allocation7], %s891_s25, %s891_s25, %s892_s26  }
  0x35   :  { %s837_s17 = scalar_lea.hbm %s1096_s7, 1024 }
  0x36   :  { %p838_p10 = scmp.ne.s32.totalorder %s1096_s7, %s837_s17  ;;  %p841_p11 = scmp.lt.u32.totalorder %s837_s17, %s1096_s7 }
  0x38   :  { %p843_p12 = pnand %p841_p11, %p838_p10 }
  0x3a   :  { %846 = shalt.err (!%p843_p12)
}
  0x3b   :  { %s847_s21 = scalar_lea.vmem %s992_s22, 1024  ;;  %p852_p0 = scmp.lt.s32.totalorder %s992_s22, %s992_s22 }
  0x3c   :  { %p848_p13 = scmp.ne.s32.totalorder %s992_s22, %s847_s21  ;;  %p853_p1 = scmp.lt.s32.totalorder %s847_s21, %s847_s21 }
  0x3e   :  { %p854_p2 = por %p853_p1, %p852_p0 }
  0x40   :  { %p855_p3 = pnand %p854_p2, %p848_p13 }
  0x42   :  { %858 = shalt.err (!%p855_p3)
}
  0x43   :  { %74 = dma.hbm_to_vmem [thread:$0]  %s1096_s7, 1024, %s992_s22, [#allocation10], %s891_s25, %s891_s25, %s892_s26  }
  0x44   :  { %881 = dma.done.wait [#allocation4], 128  }
  0x45   :  { %882 = vsyncadd [#allocation4], 4294967168 }
  0x46   :  { %883 = dma.done.wait [#allocation7], 2048  }
  0x47   :  { %884 = vsyncadd [#allocation7], 4294965248 }
  0x48   :  { %885 = dma.done.wait [#allocation10], 1024  }
  0x49   :  { %886 = vsyncadd [#allocation10], 4294966272  ;;  %v895_v0 = vmov 0.0   ;;  %vm896_vm0 = vmmov 0   ;;  %v740_v1 = vld [vmem:[#allocation6] sm:$0xff]   ;;  %v741_v2 = vld [vmem:[#allocation6 + $0x8] sm:$0xff]  }
  0x4a   :  { %669 = vmatprep.subr.bf16.mxu0 %v895_v0  ;;  %685 = vmatprep.mubr.msk.bf16.mxu0 %vm896_vm0, %v895_v0  ;;  %v742_v3 = vld [vmem:[#allocation6 + $0x10] sm:$0xff]   ;;  %v743_v4 = vld [vmem:[#allocation6 + $0x18] sm:$0xff]   ;;  %v744_v5 = vld [vmem:[#allocation6 + $0x20] sm:$0xff]  }
  0x4b   :  { %689 = vmatprep.subr.bf16.mxu1 %v895_v0  ;;  %705 = vmatprep.mubr.msk.bf16.mxu1 %vm896_vm0, %v895_v0  ;;  %v745_v6 = vld [vmem:[#allocation6 + $0x28] sm:$0xff]   ;;  %v746_v7 = vld [vmem:[#allocation6 + $0x30] sm:$0xff]   ;;  %v747_v8 = vld [vmem:[#allocation6 + $0x38] sm:$0xff]  }
  0x4c   :  { %670 = vmatpush3.bf16.msra.mxu0 %v740_v1  ;;  %v748_v9 = vld [vmem:[#allocation3] sm:$0xff]   ;;  %v749_v10 = vld [vmem:[#allocation9] sm:$0xff]   ;;  %v750_v11 = vld [vmem:[#allocation9 + $0x8] sm:$0xff]  }
  0x4d   :  { %671 = vmatprep.subr.bf16.mxu0 %v895_v0  ;;  %v751_v12 = vld [vmem:[#allocation9 + $0x10] sm:$0xff]   ;;  %v752_v13 = vld [vmem:[#allocation9 + $0x18] sm:$0xff]   ;;  %v753_v14 = vld [vmem:[#allocation9 + $0x20] sm:$0xff]  }
  0x4e   :  { %v754_v15 = vld [vmem:[#allocation9 + $0x28] sm:$0xff]   ;;  %v756_v16 = vld [vmem:[#allocation9 + $0x30] sm:$0xff]   ;;  %v758_v17 = vld [vmem:[#allocation9 + $0x38] sm:$0xff]  }
  0x4f   :  { %v755_v18 = vld [vmem:[#allocation8] sm:$0xff]   ;;  %v757_v19 = vld [vmem:[#allocation8 + $0x8] sm:$0xff]   ;;  %v759_v20 = vld [vmem:[#allocation8 + $0x10] sm:$0xff]  }
  0x50   :  { %672 = vmatpush3.bf16.msra.mxu0 %v741_v2  ;;  %690 = vmatpush3.bf16.msra.mxu1 %v755_v18  ;;  %v760_v21 = vld [vmem:[#allocation8 + $0x18] sm:$0xff]   ;;  %v761_v22 = vld [vmem:[#allocation8 + $0x20] sm:$0xff]   ;;  %v762_v23 = vld [vmem:[#allocation8 + $0x28] sm:$0xff]  }
  0x51   :  { %673 = vmatprep.subr.bf16.mxu0 %v895_v0  ;;  %691 = vmatprep.subr.bf16.mxu1 %v895_v0  ;;  %v763_v24 = vld [vmem:[#allocation8 + $0x30] sm:$0xff]   ;;  %v764_v25 = vld [vmem:[#allocation8 + $0x38] sm:$0xff]  }
  0x52   :  { %v620_v55 = vld [vmem:[%s1091_s2] ss:$0 sm:$0xff] }
  0x53   :  { %v621_v58 = vld [vmem:[%s1092_s3] ss:$0 sm:$0xff] }
  0x54   :  { %674 = vmatpush3.bf16.msra.mxu0 %v742_v3  ;;  %692 = vmatpush3.bf16.msra.mxu1 %v757_v19 }
  0x55   :  { %675 = vmatprep.subr.bf16.mxu0 %v895_v0  ;;  %693 = vmatprep.subr.bf16.mxu1 %v895_v0 }
  0x58   :  { %676 = vmatpush3.bf16.msra.mxu0 %v743_v4  ;;  %694 = vmatpush3.bf16.msra.mxu1 %v759_v20 }
  0x59   :  { %677 = vmatprep.subr.bf16.mxu0 %v895_v0  ;;  %695 = vmatprep.subr.bf16.mxu1 %v895_v0 }
  0x5c   :  { %678 = vmatpush3.bf16.msra.mxu0 %v744_v5  ;;  %696 = vmatpush3.bf16.msra.mxu1 %v760_v21 }
  0x5d   :  { %679 = vmatprep.subr.bf16.mxu0 %v895_v0  ;;  %697 = vmatprep.subr.bf16.mxu1 %v895_v0 }
  0x60   :  { %680 = vmatpush3.bf16.msra.mxu0 %v745_v6  ;;  %698 = vmatpush3.bf16.msra.mxu1 %v761_v22 }
  0x61   :  { %681 = vmatprep.subr.bf16.mxu0 %v895_v0  ;;  %699 = vmatprep.subr.bf16.mxu1 %v895_v0 }
  0x64   :  { %682 = vmatpush3.bf16.msra.mxu0 %v746_v7  ;;  %700 = vmatpush3.bf16.msra.mxu1 %v762_v23 }
  0x65   :  { %683 = vmatprep.subr.bf16.mxu0 %v895_v0  ;;  %701 = vmatprep.subr.bf16.mxu1 %v895_v0 }
  0x68   :  { %684 = vmatpush3.bf16.msra.mxu0 %v747_v8  ;;  %702 = vmatpush3.bf16.msra.mxu1 %v763_v24 }
  0x69   :  { %709 = vmatprep.subr.bf16.mxu0 %v895_v0  ;;  %703 = vmatprep.subr.bf16.mxu1 %v895_v0 }
  0x6b   :  { %686 = vmatmul.mubr.bf16.vlgmr.msra.gmra.mrb[0].mxu0 %v748_v9 }
  0x6c   :  { %710 = vmatpush3.bf16.msra.mxu0 %v749_v10  ;;  %725 = vmatprep.mubr.msk.bf16.mxu0 %vm896_vm0, %v895_v0 }
  0x6d   :  { %711 = vmatprep.subr.bf16.mxu0 %v895_v0  ;;  %704 = vmatpush3.bf16.msra.mxu1 %v764_v25 }
  0x70   :  { %712 = vmatpush3.bf16.msra.mxu0 %v750_v11 }
  0x71   :  { %713 = vmatprep.subr.bf16.mxu0 %v895_v0 }
  0x74   :  { %714 = vmatpush3.bf16.msra.mxu0 %v751_v12 }
  0x75   :  { %715 = vmatprep.subr.bf16.mxu0 %v895_v0 }
  0x78   :  { %716 = vmatpush3.bf16.msra.mxu0 %v752_v13 }
  0x79   :  { %717 = vmatprep.subr.bf16.mxu0 %v895_v0 }
  0x7c   :  { %718 = vmatpush3.bf16.msra.mxu0 %v753_v14 }
  0x7d   :  { %719 = vmatprep.subr.bf16.mxu0 %v895_v0 }
  0x80   :  { %720 = vmatpush3.bf16.msra.mxu0 %v754_v15 }
  0x81   :  { %721 = vmatprep.subr.bf16.mxu0 %v895_v0 }
  0x84   :  { %722 = vmatpush3.bf16.msra.mxu0 %v756_v16 }
  0x85   :  { %723 = vmatprep.subr.bf16.mxu0 %v895_v0 }
  0x88   :  { %724 = vmatpush3.bf16.msra.mxu0 %v758_v17 }
  0x8b   :  { %726 = vmatmul.mubr.bf16.vlgmr.msra.gmra.mrb[4].mxu0 %v748_v9 }
 0x13e   :  { %v204_v26 = vpop.f32.mrb[0].mxu0 }
 0x13f   :  { %v687_v27 = vpop.f32.mrb[1].mxu0  ;;  %v220_v29 = vmul.f32 %v204_v26, %v204_v26 }
 0x140   :  { %v207_v28 = vpop.f32.mrb[2].mxu0 }
 0x141   :  { %v213_v30 = vadd.f32 %v207_v28, %v204_v26  ;;  %v221_v31 = vmul.f32 %v207_v28, %v207_v28  ;;  %v688_v32 = vpop.f32.mrb[3].mxu0 }
 0x143   :  { %v214_v33 = vrot.slane %v213_v30, 4  ;;  %v222_v34 = vadd.f32 %v221_v31, %v220_v29 }
 0x145   :  { %v215_v35 = vadd.f32 %v214_v33, %v213_v30  ;;  %v223_v36 = vrot.slane %v222_v34, 4  ;;  %v531_v33 = vlaneseq }
 0x147   :  { %v216_v37 = vrot.slane %v215_v35, 2  ;;  %v224_v38 = vadd.f32 %v223_v36, %v222_v34  ;;  %v532_v34 = vshrl.u32 %v531_v33, 7 }
 0x149   :  { %v217_v39 = vadd.f32 %v216_v37, %v215_v35  ;;  %v225_v40 = vrot.slane %v224_v38, 2  ;;  %v533_v35 = vadd.s32 8, %v532_v34 }
 0x14b   :  { %v218_v41 = vrot.slane %v217_v39, 1  ;;  %v226_v42 = vadd.f32 %v225_v40, %v224_v38  ;;  %vm535_vm1 = vcmp.lt.s32.totalorder %v533_v35, 12 }
 0x14d   :  { %v219_v43 = vadd.f32 %v218_v41, %v217_v39  ;;  %v227_v44 = vrot.slane %v226_v42, 1 }
 0x14f   :  { %v228_v45 = vadd.f32 %v227_v44, %v226_v42  ;;  %v229_v46 = vmul.f32 0.083333336, %v219_v43 }
 0x151   :  { %v230_v47 = vmul.f32 0.083333336, %v228_v45  ;;  %v231_v48 = vmul.f32 %v229_v46, %v229_v46  ;;  %v235_v49 = vsub.f32 %v207_v28, %v229_v46  ;;  %v234_v50 = vsub.f32 %v204_v26, %v229_v46 }
 0x153   :  { %v232_v51 = vsub.f32 %v230_v47, %v231_v48 }
 0x155   :  { %v233_v52 = vmax.f32 %v232_v51, 0.0 }
 0x157   :  { %v236_v53 = vadd.f32 1e-05, %v233_v52 }
 0x159   :  { %765 = vrsqrt.f32 %v236_v53 }
 0x15e   :  { %v468_v2 = vpop.f32.mrb[4].mxu0 }
 0x15f   :  { %v485_v3 = vmul.f32 %v468_v2, %v468_v2  ;;  %v727_v4 = vpop.f32.mrb[5].mxu0 }
 0x160   :  { %v471_v5 = vpop.f32.mrb[6].mxu0 }
 0x161   :  { %v478_v6 = vadd.f32 %v471_v5, %v468_v2  ;;  %v486_v7 = vmul.f32 %v471_v5, %v471_v5  ;;  %v728_v8 = vpop.f32.mrb[7].mxu0 }
 0x162   :  { %v639_v8 = vld [vmem:[%s1098_s9] ss:$0 sm:$0xff] }
 0x163   :  { %v766_v54 = vpop.eup %765  ;;  %v479_v9 = vrot.slane %v478_v6, 4  ;;  %v487_v10 = vadd.f32 %v486_v7, %v485_v3  ;;  %v640_v3 = vld [vmem:[%s1094_s5] ss:$0 sm:$0xff] }
 0x164   :  { %v239_v56 = vmul.f32 %v766_v54, %v235_v49  ;;  %v238_v57 = vmul.f32 %v766_v54, %v234_v50 }
 0x165   :  { %v480_v11 = vadd.f32 %v479_v9, %v478_v6  ;;  %v488_v12 = vrot.slane %v487_v10, 4  ;;  %v641_v9 = vld [vmem:[%s1095_s6] ss:$0 sm:$0xff] }
 0x166   :  { %v247_v59 = vmul.f32 %v620_v55, %v239_v56  ;;  %v246_v60 = vmul.f32 %v620_v55, %v238_v57 }
 0x167   :  { %v481_v13 = vrot.slane %v480_v11, 2  ;;  %v489_v14 = vadd.f32 %v488_v12, %v487_v10 }
 0x168   :  { %v254_v61 = vadd.f32 %v621_v58, %v246_v60  ;;  %v255_v62 = vadd.f32 %v621_v58, %v247_v59 }
 0x169   :  { %v482_v15 = vadd.f32 %v481_v13, %v480_v11  ;;  %v490_v16 = vrot.slane %v489_v14, 2 }
 0x16a   :  { %v256_v63 = vmax.f32 %v254_v61, 0.0  ;;  %v257_v0 = vmax.f32 %v255_v62, 0.0 }
 0x16b   :  { %v483_v17 = vrot.slane %v482_v15, 1  ;;  %v491_v18 = vadd.f32 %v490_v16, %v489_v14 }
 0x16c   :  { %v260_v1 = vpack.c.bf16 %v257_v0, %v256_v63 }
 0x16d   :  { %v484_v19 = vadd.f32 %v483_v17, %v482_v15  ;;  %v492_v20 = vrot.slane %v491_v18, 1 }
 0x16e   :  { %706 = vmatmul.mubr.bf16.vlgmr.msra.gmra.mrb[0].mxu1 %v260_v1  ;;  %v638_v1 = vld [vmem:[%s1097_s8] ss:$0 sm:$0xff]  ;;  %s897_s8 = smov [#allocation11]  }
 0x16f   :  { %v493_v21 = vadd.f32 %v492_v20, %v491_v18  ;;  %v494_v22 = vmul.f32 0.083333336, %v484_v19  ;;  %s596_s5 = sshll.u32 %s897_s8, 4  ;;  %s597_s5 = int_to_ptr.vmem [resolvable:$true] %s596_s5 }
 0x170   :  { %s859_s9 = scalar_lea.vmem %s597_s5, 256  ;;  %p864_p5 = scmp.lt.s32.totalorder %s597_s5, %s597_s5 }
 0x171   :  { %v495_v23 = vmul.f32 0.083333336, %v493_v21  ;;  %v496_v24 = vmul.f32 %v494_v22, %v494_v22  ;;  %v499_v25 = vsub.f32 %v468_v2, %v494_v22  ;;  %v500_v26 = vsub.f32 %v471_v5, %v494_v22  ;;  %p860_p4 = scmp.ne.s32.totalorder %s597_s5, %s859_s9  ;;  %p865_p6 = scmp.lt.s32.totalorder %s859_s9, %s859_s9 }
 0x173   :  { %v497_v27 = vsub.f32 %v495_v23, %v496_v24  ;;  %p866_p7 = por %p865_p6, %p864_p5 }
 0x175   :  { %v498_v28 = vmax.f32 %v497_v27, 0.0  ;;  %p867_p8 = pnand %p866_p7, %p860_p4 }
 0x177   :  { %v501_v29 = vadd.f32 1e-05, %v498_v28 }
 0x179   :  { %767 = vrsqrt.f32 %v501_v29 }
 0x183   :  { %v768_v30 = vpop.eup %767 }
 0x184   :  { %v503_v31 = vmul.f32 %v768_v30, %v499_v25  ;;  %v504_v32 = vmul.f32 %v768_v30, %v500_v26 }
 0x186   :  { %v511_v4 = vmul.f32 %v638_v1, %v503_v31  ;;  %v512_v5 = vmul.f32 %v638_v1, %v504_v32 }
 0x188   :  { %v519_v12 = vadd.f32 %v639_v8, %v511_v4  ;;  %v520_v13 = vadd.f32 %v639_v8, %v512_v5 }
 0x241   :  { %v359_v36 = vpop.f32.mrb[0].mxu1 }
 0x242   :  { %v707_v37 = vpop.f32.mrb[1].mxu1  ;;  %v547_v42 = vmul.f32 %v359_v36, %v359_v36 }
 0x243   :  { %v362_v38 = vpop.f32.mrb[2].mxu1 }
 0x244   :  { %v708_v39 = vpop.f32.mrb[3].mxu1  ;;  %v537_v40 = vsel %vm535_vm1, %v362_v38, 0.0 }
 0x245   :  { %v540_v41 = vadd.f32 %v537_v40, %v359_v36  ;;  %v548_v43 = vmul.f32 %v537_v40, %v537_v40 }
 0x247   :  { %v541_v44 = vrot.slane %v540_v41, 4  ;;  %v549_v45 = vadd.f32 %v548_v43, %v547_v42 }
 0x249   :  { %v542_v46 = vadd.f32 %v541_v44, %v540_v41  ;;  %v550_v47 = vrot.slane %v549_v45, 4 }
 0x24b   :  { %v543_v48 = vrot.slane %v542_v46, 2  ;;  %v551_v49 = vadd.f32 %v550_v47, %v549_v45 }
 0x24d   :  { %v544_v50 = vadd.f32 %v543_v48, %v542_v46  ;;  %v552_v51 = vrot.slane %v551_v49, 2 }
 0x24f   :  { %v545_v52 = vrot.slane %v544_v50, 1  ;;  %v553_v53 = vadd.f32 %v552_v51, %v551_v49 }
 0x251   :  { %v546_v54 = vadd.f32 %v545_v52, %v544_v50  ;;  %v554_v55 = vrot.slane %v553_v53, 1 }
 0x253   :  { %v555_v56 = vadd.f32 %v554_v55, %v553_v53  ;;  %v556_v57 = vmul.f32 0.083333336, %v546_v54 }
 0x255   :  { %v557_v58 = vmul.f32 0.083333336, %v555_v56  ;;  %v558_v59 = vmul.f32 %v556_v57, %v556_v57  ;;  %v561_v60 = vsub.f32 %v359_v36, %v556_v57  ;;  %v562_v61 = vsub.f32 %v537_v40, %v556_v57 }
 0x257   :  { %v559_v62 = vsub.f32 %v557_v58, %v558_v59 }
 0x259   :  { %v560_v63 = vmax.f32 %v559_v62, 0.0 }
 0x25b   :  { %v563_v0 = vadd.f32 1e-05, %v560_v63 }
 0x25d   :  { %769 = vrsqrt.f32 %v563_v0 }
 0x267   :  { %v770_v2 = vpop.eup %769 }
 0x268   :  { %v565_v6 = vmul.f32 %v770_v2, %v561_v60  ;;  %v566_v7 = vmul.f32 %v770_v2, %v562_v61 }
 0x26a   :  { %v573_v10 = vmul.f32 %v640_v3, %v565_v6  ;;  %v574_v11 = vmul.f32 %v640_v3, %v566_v7 }
 0x26c   :  { %v581_v14 = vadd.f32 %v641_v9, %v573_v10  ;;  %v582_v15 = vadd.f32 %v641_v9, %v574_v11 }
 0x26e   :  { %v585_v16 = vadd.f32 %v581_v14, %v519_v12  ;;  %v586_v17 = vadd.f32 %v582_v15, %v520_v13 }
 0x270   :  { %v587_v18 = vmax.f32 %v585_v16, 0.0  ;;  %v588_v19 = vmax.f32 %v586_v17, 0.0 }
 0x272   :  { %589 = vst [vmem:[#allocation11] sm:$0xff] %v587_v18  ;;  %590 = vst [vmem:[#allocation11 + $0x8] sm:$0xff] %v588_v19 }
 0x273   :  { %870 = shalt.err (!%p867_p8)
}
 0x274   :  { %s871_s0 = scalar_lea.hbm %s1099_s10, 256 }
 0x275   :  { %p872_p9 = scmp.ne.s32.totalorder %s1099_s10, %s871_s0  ;;  %p875_p10 = scmp.lt.u32.totalorder %s871_s0, %s1099_s10 }
 0x277   :  { %p877_p11 = pnand %p875_p10, %p872_p9 }
 0x279   :  { %880 = shalt.err (!%p877_p11)
}
 0x27a   :  { %s898_s17 = smov 128   ;;  %s899_s18 = smov 8  }
 0x27b   :  { %602 = dma.vmem_to_hbm [thread:$0]  %s597_s5, 256, %s1099_s10, [#allocation5], %s898_s17, %s898_s17, %s899_s18  }
 0x27c   :  { %887 = dma.done.wait [#allocation5], 256  }
 0x27d   :  { %888 = vsyncadd [#allocation5], 4294967040 }
 0x27e   :  { %606 = vsyncpa [#allocation4], 1 }
 0x27f   :  { %607 = vsyncpa [#allocation7], 1 }
 0x280   :  { %608 = vsyncpa [#allocation10], 1 }
 0x281   :  { %609 = vsyncpa [#allocation5], 1 }

</bundles_post_ra>
